<compile_context>
chip_gen: v6e
topology: v6e:2x2x1
jax: 0.10.0
libtpu: 0.0.40
codegen_flags: <defaults>
</compile_context>

<pallas_src>
import math

import jax
import jax.numpy as jnp
from jax.experimental import pallas as pl
from jax.experimental.pallas import tpu as pltpu

LANE = 128  # TPU lane width; feature dims are zero-padded to this for dense vregs.


def policy_nn_kernel(x_ref,
                     w1_ref, b1_ref,
                     w2_ref, b2_ref,
                     w3_ref, b3_ref,
                     w4_ref, b4_ref,
                     o_ref):
    """Fused 4-layer MLP on one (TB, D_in) batch tile, all operands in VMEM.

    Weights/activations are bf16 (MXU-native), accumulation + bias + tanh are
    f32 (v5e-safe), output store is a lane-dense (TB, 128) f32 slab.
    """
    h = x_ref[...]                                                        # (TB, D_in) bf16
    h = jnp.dot(h, w1_ref[...], preferred_element_type=jnp.float32) + b1_ref[...]
    h = jnp.tanh(h).astype(jnp.bfloat16)

    h = jnp.dot(h, w2_ref[...], preferred_element_type=jnp.float32) + b2_ref[...]
    h = jnp.tanh(h).astype(jnp.bfloat16)

    h = jnp.dot(h, w3_ref[...], preferred_element_type=jnp.float32) + b3_ref[...]
    h = jnp.tanh(h).astype(jnp.bfloat16)

    out = jnp.dot(h, w4_ref[...], preferred_element_type=jnp.float32) + b4_ref[...]
    o_ref[...] = out.astype(o_ref.dtype)


def _pad_lanes(a, target):
    pad = target - a.shape[-1]
    if pad <= 0:
        return a
    return jnp.pad(a, [(0, 0)] * (a.ndim - 1) + [(0, pad)])


def prepare_params(params):
    """Zero-pad feature dims to 128 lanes, cast weights to bf16, biases to f32.

    params: list of (W, b), W: (in, out) f32, b: (1, out) f32.
    Returns list of (W_pad bf16 (in_pad, 128k), b_pad f32 (1, 128k)).
    """
    prepared = []
    prev_pad = params[0][0].shape[0]          # input feature dim (64) stays as-is
    for w, b in params:
        in_dim, out_dim = w.shape
        out_pad = max(LANE, ((out_dim + LANE - 1) // LANE) * LANE)
        w_p = jnp.zeros((prev_pad, out_pad), jnp.float32)
        w_p = w_p.at[:in_dim, :out_dim].set(w)
        b_p = _pad_lanes(jnp.asarray(b, jnp.float32).reshape(1, -1), out_pad)
        prepared.append((w_p.astype(jnp.bfloat16), b_p))
        prev_pad = out_pad
    return prepared


def policy_nn_forward(x, prepared_params, out_dim, *, block_batch=512):
    """x: (B, D_in) float. prepared_params: output of prepare_params()."""
    batch, d_in = x.shape

    # Batch tile: sublane-aligned, capped at block_batch; pad B to whole tiles.
    tb = min(block_batch, max(8, ((batch + 7) // 8) * 8))
    tb = ((tb + 7) // 8) * 8
    batch_pad = ((batch + tb - 1) // tb) * tb
    if batch_pad != batch:
        x = jnp.pad(x, ((0, batch_pad - batch), (0, 0)))
    x = x.astype(jnp.bfloat16)

    flat = [a for wb in prepared_params for a in wb]
    out_pad = prepared_params[-1][0].shape[1]
    n_tiles = batch_pad // tb

    def resident(a):  # weights/biases: same block every grid step -> DMA'd once
        return pl.BlockSpec(a.shape, lambda i: (0,) * a.ndim)

    flops = 2 * batch_pad * sum(w.shape[0] * w.shape[1] for w, _ in prepared_params)
    transcendentals = 3 * batch_pad * LANE
    bytes_accessed = (x.size * x.dtype.itemsize
                      + batch_pad * out_pad * 4
                      + sum(w.size * 2 + b.size * 4 for w, b in prepared_params))

    out = pl.pallas_call(
        policy_nn_kernel,
        out_shape=jax.ShapeDtypeStruct((batch_pad, out_pad), jnp.float32),
        grid=(n_tiles,),
        in_specs=[pl.BlockSpec((tb, d_in), lambda i: (i, 0))]
                 + [resident(a) for a in flat],
        out_specs=pl.BlockSpec((tb, out_pad), lambda i: (i, 0)),
        compiler_params=pltpu.CompilerParams(
            dimension_semantics=("parallel",)),
        cost_estimate=pl.CostEstimate(flops=flops,
                                      transcendentals=transcendentals,
                                      bytes_accessed=bytes_accessed),
    )(x, *flat)

    return out[:batch, :out_dim]


def init_linear(key, in_features, out_features):
    """Deterministic PyTorch-style nn.Linear init: U(-1/sqrt(in), 1/sqrt(in))."""
    kw, kb = jax.random.split(key)
    bound = 1.0 / math.sqrt(in_features)
    w = jax.random.uniform(kw, (in_features, out_features), jnp.float32,
                           minval=-bound, maxval=bound)
    b = jax.random.uniform(kb, (1, out_features), jnp.float32,
                           minval=-bound, maxval=bound)
    return w, b


def reference_forward(x, params):
    """Pure-JAX reference mirroring the kernel's precision scheme
    (bf16 weights/activations, f32 accumulation + bias + tanh)."""
    h = x.astype(jnp.bfloat16)
    for i, (w, b) in enumerate(params):
        h = jnp.dot(h.astype(jnp.float32),
                    w.astype(jnp.bfloat16).astype(jnp.float32),
                    preferred_element_type=jnp.float32) + b.reshape(1, -1)
        if i < len(params) - 1:
            h = jnp.tanh(h).astype(jnp.bfloat16)
    return h


if __name__ == "__main__":
    # 8-queens flavored sizes: input = 8x8 board flattened = 64,
    # hidden_layer_sizes = [32, 32, 32], output = 8 (column-choice logits).
    input_layer_size = 64
    hidden_layer_sizes = [32, 32, 32]
    output_layer_size = 8

    key = jax.random.PRNGKey(0)
    kx, kx2, k1, k2, k3, k4 = jax.random.split(key, 6)

    sizes = [input_layer_size] + hidden_layer_sizes + [output_layer_size]
    keys = [k1, k2, k3, k4]
    params = [init_linear(keys[i], sizes[i], sizes[i + 1]) for i in range(4)]
    prepared = prepare_params(params)

    # Small shape (single tile).
    batch = 8
    x = jax.random.normal(kx, (batch, input_layer_size), jnp.float32)
    out = jax.block_until_ready(policy_nn_forward(x, prepared, output_layer_size))
    ref = reference_forward(x, params)
    assert out.shape == (batch, output_layer_size)
    assert jnp.allclose(out, ref, atol=1e-2, rtol=1e-2), "mismatch vs JAX reference"

    # Larger, non-multiple batch exercises the multi-tile grid + padding path.
    batch2 = 1000
    x2 = jax.random.normal(kx2, (batch2, input_layer_size), jnp.float32)
    out2 = jax.block_until_ready(policy_nn_forward(x2, prepared, output_layer_size,
                                                   block_batch=256))
    ref2 = reference_forward(x2, params)
    assert out2.shape == (batch2, output_layer_size)
    assert jnp.allclose(out2, ref2, atol=1e-2, rtol=1e-2), "mismatch vs JAX reference"

    print("KERNEL_OK")
</pallas_src>

<mosaic_0001>
module attributes {stable_mosaic.version = 11 : i64} {
  func.func @policy_nn_kernel(%arg0: i32, %arg1: memref<8x64xbf16, #tpu.memory_space<vmem>>, %arg2: memref<64x128xbf16, #tpu.memory_space<vmem>>, %arg3: memref<1x128xf32, #tpu.memory_space<vmem>>, %arg4: memref<128x128xbf16, #tpu.memory_space<vmem>>, %arg5: memref<1x128xf32, #tpu.memory_space<vmem>>, %arg6: memref<128x128xbf16, #tpu.memory_space<vmem>>, %arg7: memref<1x128xf32, #tpu.memory_space<vmem>>, %arg8: memref<128x128xbf16, #tpu.memory_space<vmem>>, %arg9: memref<1x128xf32, #tpu.memory_space<vmem>>, %arg10: memref<8x128xf32, #tpu.memory_space<vmem>>) attributes {dimension_semantics = [#tpu.dimension_semantics<parallel>], iteration_bounds = array<i64: 1>, scalar_prefetch = 0 : i64, scratch_operands = 0 : i64, tpu.core_type = #tpu.core_type<tc>, window_params = [{transform_indices = @transform_0, window_bounds = array<i64: 8, 64>}, {pipeline_mode = #tpu.pipeline_mode<synchronous>, transform_indices = @transform_1, window_bounds = array<i64: 64, 128>}, {pipeline_mode = #tpu.pipeline_mode<synchronous>, transform_indices = @transform_2, window_bounds = array<i64: 1, 128>}, {pipeline_mode = #tpu.pipeline_mode<synchronous>, transform_indices = @transform_3, window_bounds = array<i64: 128, 128>}, {pipeline_mode = #tpu.pipeline_mode<synchronous>, transform_indices = @transform_4, window_bounds = array<i64: 1, 128>}, {pipeline_mode = #tpu.pipeline_mode<synchronous>, transform_indices = @transform_5, window_bounds = array<i64: 128, 128>}, {pipeline_mode = #tpu.pipeline_mode<synchronous>, transform_indices = @transform_6, window_bounds = array<i64: 1, 128>}, {pipeline_mode = #tpu.pipeline_mode<synchronous>, transform_indices = @transform_7, window_bounds = array<i64: 128, 128>}, {pipeline_mode = #tpu.pipeline_mode<synchronous>, transform_indices = @transform_8, window_bounds = array<i64: 1, 128>}, {transform_indices = @transform_9, window_bounds = array<i64: 8, 128>}]} {
    %c0 = arith.constant 0 : index
    %c0_0 = arith.constant 0 : index
    %0 = vector.load %arg1[%c0, %c0_0] : memref<8x64xbf16, #tpu.memory_space<vmem>>, vector<8x64xbf16>
    %c0_1 = arith.constant 0 : index
    %c0_2 = arith.constant 0 : index
    %1 = vector.load %arg2[%c0_1, %c0_2] : memref<64x128xbf16, #tpu.memory_space<vmem>>, vector<64x128xbf16>
    %cst = arith.constant dense<0.000000e+00> : vector<8x128xf32>
    %2 = tpu.matmul %0, %1, %cst {dimension_numbers = #tpu.dot_dimension_numbers<[1], [0], [0], [1], [0, 0, 1, 1], [], []>} : vector<8x64xbf16>, vector<64x128xbf16>, vector<8x128xf32> -> vector<8x128xf32>
    %c0_3 = arith.constant 0 : index
    %c0_4 = arith.constant 0 : index
    %3 = vector.load %arg3[%c0_3, %c0_4] : memref<1x128xf32, #tpu.memory_space<vmem>>, vector<1x128xf32>
    %4 = vector.broadcast %3 : vector<1x128xf32> to vector<8x128xf32>
    %5 = arith.addf %2, %4 : vector<8x128xf32>
    %6 = math.tanh %5 : vector<8x128xf32>
    %7 = arith.truncf %6 : vector<8x128xf32> to vector<8x128xbf16>
    %c0_5 = arith.constant 0 : index
    %c0_6 = arith.constant 0 : index
    %8 = vector.load %arg4[%c0_5, %c0_6] : memref<128x128xbf16, #tpu.memory_space<vmem>>, vector<128x128xbf16>
    %cst_7 = arith.constant dense<0.000000e+00> : vector<8x128xf32>
    %9 = tpu.matmul %7, %8, %cst_7 {dimension_numbers = #tpu.dot_dimension_numbers<[1], [0], [0], [1], [0, 0, 1, 1], [], []>} : vector<8x128xbf16>, vector<128x128xbf16>, vector<8x128xf32> -> vector<8x128xf32>
    %c0_8 = arith.constant 0 : index
    %c0_9 = arith.constant 0 : index
    %10 = vector.load %arg5[%c0_8, %c0_9] : memref<1x128xf32, #tpu.memory_space<vmem>>, vector<1x128xf32>
    %11 = vector.broadcast %10 : vector<1x128xf32> to vector<8x128xf32>
    %12 = arith.addf %9, %11 : vector<8x128xf32>
    %13 = math.tanh %12 : vector<8x128xf32>
    %14 = arith.truncf %13 : vector<8x128xf32> to vector<8x128xbf16>
    %c0_10 = arith.constant 0 : index
    %c0_11 = arith.constant 0 : index
    %15 = vector.load %arg6[%c0_10, %c0_11] : memref<128x128xbf16, #tpu.memory_space<vmem>>, vector<128x128xbf16>
    %cst_12 = arith.constant dense<0.000000e+00> : vector<8x128xf32>
    %16 = tpu.matmul %14, %15, %cst_12 {dimension_numbers = #tpu.dot_dimension_numbers<[1], [0], [0], [1], [0, 0, 1, 1], [], []>} : vector<8x128xbf16>, vector<128x128xbf16>, vector<8x128xf32> -> vector<8x128xf32>
    %c0_13 = arith.constant 0 : index
    %c0_14 = arith.constant 0 : index
    %17 = vector.load %arg7[%c0_13, %c0_14] : memref<1x128xf32, #tpu.memory_space<vmem>>, vector<1x128xf32>
    %18 = vector.broadcast %17 : vector<1x128xf32> to vector<8x128xf32>
    %19 = arith.addf %16, %18 : vector<8x128xf32>
    %20 = math.tanh %19 : vector<8x128xf32>
    %21 = arith.truncf %20 : vector<8x128xf32> to vector<8x128xbf16>
    %c0_15 = arith.constant 0 : index
    %c0_16 = arith.constant 0 : index
    %22 = vector.load %arg8[%c0_15, %c0_16] : memref<128x128xbf16, #tpu.memory_space<vmem>>, vector<128x128xbf16>
    %cst_17 = arith.constant dense<0.000000e+00> : vector<8x128xf32>
    %23 = tpu.matmul %21, %22, %cst_17 {dimension_numbers = #tpu.dot_dimension_numbers<[1], [0], [0], [1], [0, 0, 1, 1], [], []>} : vector<8x128xbf16>, vector<128x128xbf16>, vector<8x128xf32> -> vector<8x128xf32>
    %c0_18 = arith.constant 0 : index
    %c0_19 = arith.constant 0 : index
    %24 = vector.load %arg9[%c0_18, %c0_19] : memref<1x128xf32, #tpu.memory_space<vmem>>, vector<1x128xf32>
    %25 = vector.broadcast %24 : vector<1x128xf32> to vector<8x128xf32>
    %26 = arith.addf %23, %25 : vector<8x128xf32>
    %c0_20 = arith.constant 0 : index
    %c0_21 = arith.constant 0 : index
    %27 = vector.load %arg10[%c0_20, %c0_21] : memref<8x128xf32, #tpu.memory_space<vmem>>, vector<8x128xf32>
    tpu.vector_store %arg10[%c0_20, %c0_21], %26 {strides = array<i32>} : memref<8x128xf32, #tpu.memory_space<vmem>>, vector<8x128xf32>,
    return
  }
  func.func @transform_0(%arg0: i32) -> (i32, i32) {
    %c0_i32 = arith.constant 0 : i32
    %c0_i32_0 = arith.constant 0 : i32
    return %arg0, %c0_i32 : i32, i32
  }
  func.func @transform_1(%arg0: i32) -> (i32, i32) {
    %c0_i32 = arith.constant 0 : i32
    %c0_i32_0 = arith.constant 0 : i32
    %c0_i32_1 = arith.constant 0 : i32
    return %c0_i32, %c0_i32_0 : i32, i32
  }
  func.func @transform_2(%arg0: i32) -> (i32, i32) {
    %c0_i32 = arith.constant 0 : i32
    %c0_i32_0 = arith.constant 0 : i32
    %c0_i32_1 = arith.constant 0 : i32
    return %c0_i32, %c0_i32_0 : i32, i32
  }
  func.func @transform_3(%arg0: i32) -> (i32, i32) {
    %c0_i32 = arith.constant 0 : i32
    %c0_i32_0 = arith.constant 0 : i32
    %c0_i32_1 = arith.constant 0 : i32
    return %c0_i32, %c0_i32_0 : i32, i32
  }
  func.func @transform_4(%arg0: i32) -> (i32, i32) {
    %c0_i32 = arith.constant 0 : i32
    %c0_i32_0 = arith.constant 0 : i32
    %c0_i32_1 = arith.constant 0 : i32
    return %c0_i32, %c0_i32_0 : i32, i32
  }
  func.func @transform_5(%arg0: i32) -> (i32, i32) {
    %c0_i32 = arith.constant 0 : i32
    %c0_i32_0 = arith.constant 0 : i32
    %c0_i32_1 = arith.constant 0 : i32
    return %c0_i32, %c0_i32_0 : i32, i32
  }
  func.func @transform_6(%arg0: i32) -> (i32, i32) {
    %c0_i32 = arith.constant 0 : i32
    %c0_i32_0 = arith.constant 0 : i32
    %c0_i32_1 = arith.constant 0 : i32
    return %c0_i32, %c0_i32_0 : i32, i32
  }
  func.func @transform_7(%arg0: i32) -> (i32, i32) {
    %c0_i32 = arith.constant 0 : i32
    %c0_i32_0 = arith.constant 0 : i32
    %c0_i32_1 = arith.constant 0 : i32
    return %c0_i32, %c0_i32_0 : i32, i32
  }
  func.func @transform_8(%arg0: i32) -> (i32, i32) {
    %c0_i32 = arith.constant 0 : i32
    %c0_i32_0 = arith.constant 0 : i32
    %c0_i32_1 = arith.constant 0 : i32
    return %c0_i32, %c0_i32_0 : i32, i32
  }
  func.func @transform_9(%arg0: i32) -> (i32, i32) {
    %c0_i32 = arith.constant 0 : i32
    %c0_i32_0 = arith.constant 0 : i32
    return %arg0, %c0_i32 : i32, i32
  }
}

</mosaic_0001>

<bundles_post_ra>
// kernel: tpu_custom_call.1
= control target key start
LH: loop header
LB: loop body
LE: loop exit
PB: predicated region body
PF: predicated region fallthrough
CT: control target
= control target key end

     0   :  { %14 = vsyncpa [#allocation3], 0  ;;  %s988_s0 = inlined_call_operand.hbm [shape: bf16[8,64], index: 0, kind: input, shape index: {}]   ;;  %s989_s1 = inlined_call_operand.hbm [shape: bf16[64,128], index: 1, kind: input, shape index: {}]   ;;  %s990_s2 = inlined_call_operand.vmem [shape: f32[1,128], index: 2, kind: input, shape index: {}]   ;;  %s991_s3 = inlined_call_operand.hbm [shape: bf16[128,128], index: 3, kind: input, shape index: {}]   ;;  %s992_s4 = inlined_call_operand.vmem [shape: f32[1,128], index: 4, kind: input, shape index: {}]   ;;  %s993_s5 = inlined_call_operand.hbm [shape: bf16[128,128], index: 5, kind: input, shape index: {}]   ;;  %s994_s6 = inlined_call_operand.vmem [shape: f32[1,128], index: 6, kind: input, shape index: {}]   ;;  %s995_s7 = inlined_call_operand.hbm [shape: bf16[128,128], index: 7, kind: input, shape index: {}]   ;;  %s996_s8 = inlined_call_operand.vmem [shape: f32[1,128], index: 8, kind: input, shape index: {}]   ;;  %s997_s9 = inlined_call_operand.hbm [shape: f32[8,128], index: 9, kind: output, shape index: {}]  }
   0x1   :  { %15 = vsyncpa [#allocation6], 0 }
   0x2   :  { %16 = vsyncpa [#allocation9], 0 }
   0x3   :  { %17 = vsyncpa [#allocation4], 0  ;;  %s850_s30 = smov [#allocation5]  }
   0x4   :  { %s33_s10 = sshll.u32 %s850_s30, 4  ;;  %s34_s10 = int_to_ptr.vmem [resolvable:$true] %s33_s10 }
   0x5   :  { %s730_s11 = scalar_lea.vmem %s34_s10, 512  ;;  %p735_p1 = scmp.lt.s32.totalorder %s34_s10, %s34_s10 }
   0x6   :  { %p731_p0 = scmp.ne.s32.totalorder %s34_s10, %s730_s11  ;;  %p736_p2 = scmp.lt.s32.totalorder %s730_s11, %s730_s11 }
   0x8   :  { %p737_p3 = por %p736_p2, %p735_p1 }
   0xa   :  { %p738_p4 = pnand %p737_p3, %p731_p0 }
   0xc   :  { %741 = shalt.err (!%p738_p4)
}
   0xd   :  { %s851_s12 = smov 64   ;;  %s852_s13 = smov 4  }
   0xe   :  { %39 = dma.hbm_to_vmem [thread:$0]  %s989_s1, 512, %s34_s10, [#allocation6], %s851_s12, %s851_s12, %s852_s13  }
   0xf   :  { %s853_s16 = smov [#allocation8]   ;;  %s854_s18 = smov [#allocation2]  }
  0x10   :  { %s61_s17 = sshll.u32 %s853_s16, 4  ;;  %s24_s19 = sshll.u32 %s854_s18, 4  ;;  %s62_s17 = int_to_ptr.vmem [resolvable:$true] %s61_s17  ;;  %s25_s19 = int_to_ptr.vmem [resolvable:$true] %s24_s19 }
  0x11   :  { %s750_s20 = scalar_lea.vmem %s62_s17, 1024  ;;  %p755_p6 = scmp.lt.s32.totalorder %s62_s17, %s62_s17 }
  0x12   :  { %p751_p5 = scmp.ne.s32.totalorder %s62_s17, %s750_s20  ;;  %p756_p7 = scmp.lt.s32.totalorder %s750_s20, %s750_s20 }
  0x14   :  { %p757_p8 = por %p756_p7, %p755_p6 }
  0x16   :  { %p758_p9 = pnand %p757_p8, %p751_p5 }
  0x18   :  { %761 = shalt.err (!%p758_p9)
}
  0x19   :  { %67 = dma.hbm_to_vmem [thread:$0]  %s993_s5, 1024, %s62_s17, [#allocation9], %s851_s12, %s851_s12, %s852_s13  }
  0x1a   :  { %s770_s1 = scalar_lea.vmem %s25_s19, 64  ;;  %p775_p11 = scmp.lt.s32.totalorder %s25_s19, %s25_s19 }
  0x1b   :  { %p771_p10 = scmp.ne.s32.totalorder %s25_s19, %s770_s1  ;;  %p776_p12 = scmp.lt.s32.totalorder %s770_s1, %s770_s1 }
  0x1d   :  { %p777_p13 = por %p776_p12, %p775_p11 }
  0x1f   :  { %p778_p0 = pnand %p777_p13, %p771_p10 }
  0x21   :  { %781 = shalt.err (!%p778_p0)
}
  0x22   :  { %27 = dma.hbm_to_vmem [thread:$0]  %s988_s0, 64, %s25_s19, [#allocation3]  }
  0x23   :  { %s855_s25 = smov [#allocation7]   ;;  %s856_s27 = smov [#allocation10]  }
  0x24   :  { %s47_s26 = sshll.u32 %s855_s25, 4  ;;  %s75_s28 = sshll.u32 %s856_s27, 4  ;;  %s48_s26 = int_to_ptr.vmem [resolvable:$true] %s47_s26  ;;  %s76_s28 = int_to_ptr.vmem [resolvable:$true] %s75_s28 }
  0x25   :  { %s790_s29 = scalar_lea.vmem %s48_s26, 1024  ;;  %p795_p2 = scmp.lt.s32.totalorder %s48_s26, %s48_s26 }
  0x26   :  { %p791_p1 = scmp.ne.s32.totalorder %s48_s26, %s790_s29  ;;  %p796_p3 = scmp.lt.s32.totalorder %s790_s29, %s790_s29 }
  0x28   :  { %p797_p4 = por %p796_p3, %p795_p2 }
  0x2a   :  { %p798_p5 = pnand %p797_p4, %p791_p1 }
  0x2c   :  { %801 = shalt.err (!%p798_p5)
}
  0x2d   :  { %53 = dma.hbm_to_vmem [thread:$0]  %s991_s3, 1024, %s48_s26, [#allocation6], %s851_s12, %s851_s12, %s852_s13  }
  0x2e   :  { %s810_s0 = scalar_lea.vmem %s76_s28, 1024  ;;  %p815_p7 = scmp.lt.s32.totalorder %s76_s28, %s76_s28 }
  0x2f   :  { %p811_p6 = scmp.ne.s32.totalorder %s76_s28, %s810_s0  ;;  %p816_p8 = scmp.lt.s32.totalorder %s810_s0, %s810_s0 }
  0x31   :  { %p817_p9 = por %p816_p8, %p815_p7 }
  0x33   :  { %p818_p10 = pnand %p817_p9, %p811_p6 }
  0x35   :  { %821 = shalt.err (!%p818_p10)
}
  0x36   :  { %81 = dma.hbm_to_vmem [thread:$0]  %s995_s7, 1024, %s76_s28, [#allocation9], %s851_s12, %s851_s12, %s852_s13  }
  0x37   :  { %842 = dma.done.wait [#allocation3], 64  }
  0x38   :  { %843 = vsyncadd [#allocation3], 4294967232 }
  0x39   :  { %844 = dma.done.wait [#allocation6], 1536  }
  0x3a   :  { %845 = vsyncadd [#allocation6], 4294965760 }
  0x3b   :  { %846 = dma.done.wait [#allocation9], 2048  }
  0x3c   :  { %847 = vsyncadd [#allocation9], 4294965248  ;;  %v857_v0 = vmov 0.0   ;;  %vm858_vm0 = vmmov 0   ;;  %v688_v1 = vld [vmem:[#allocation5 + $0x18] sm:$0xff]   ;;  %v689_v2 = vld [vmem:[#allocation5 + $0x10] sm:$0xff]  }
  0x3d   :  { %606 = vmatprep.subr.bf16.mxu0 %v857_v0  ;;  %614 = vmatprep.mubr.msk.bf16.mxu0 %vm858_vm0, %v857_v0  ;;  %v692_v3 = vld [vmem:[#allocation7 + $0x38] sm:$0xff]   ;;  %v690_v4 = vld [vmem:[#allocation5 + $0x8] sm:$0xff]   ;;  %vm140_vm1 = vcmask 523264   ;;  %v693_v5 = vld [vmem:[#allocation7 + $0x30] sm:$0xff]   ;;  %s859_s16 = smov [#allocation11]  }
  0x3e   :  { %618 = vmatprep.subr.bf16.mxu1 %v857_v0  ;;  %634 = vmatprep.mubr.msk.bf16.mxu1 %vm858_vm0, %v857_v0  ;;  %v691_v6 = vld [vmem:[#allocation5] sm:$0xff]   ;;  %v694_v7 = vld [vmem:[#allocation7 + $0x28] sm:$0xff]   ;;  %v100_v8 = vld [vmem:[#allocation2] sm:$0xf]  ;;  %s530_s17 = sshll.u32 %s859_s16, 4  ;;  %s531_s17 = int_to_ptr.vmem [resolvable:$true] %s530_s17 }
  0x3f   :  { %607 = vmatpush3.bf16.msra.mxu0 %v688_v1  ;;  %619 = vmatpush3.bf16.msra.mxu1 %v692_v3  ;;  %v695_v9 = vld [vmem:[#allocation7 + $0x20] sm:$0xff]   ;;  %v696_v10 = vld [vmem:[#allocation7 + $0x18] sm:$0xff]   ;;  %v697_v11 = vld [vmem:[#allocation7 + $0x10] sm:$0xff]   ;;  %p827_p12 = scmp.lt.s32.totalorder %s531_s17, %s531_s17 }
  0x40   :  { %608 = vmatprep.subr.bf16.mxu0 %v857_v0  ;;  %620 = vmatprep.subr.bf16.mxu1 %v857_v0  ;;  %v698_v12 = vld [vmem:[#allocation7 + $0x8] sm:$0xff]   ;;  %v699_v13 = vld [vmem:[#allocation7] sm:$0xff]   ;;  %v700_v14 = vld [vmem:[#allocation8 + $0x38] sm:$0xff]  }
  0x41   :  { %v701_v15 = vld [vmem:[#allocation8 + $0x30] sm:$0xff]   ;;  %v702_v16 = vld [vmem:[#allocation8 + $0x28] sm:$0xff]   ;;  %v541_v17 = vld [vmem:[%s990_s2] ss:$0 sm:$0xff] }
  0x42   :  { %v703_v25 = vld [vmem:[#allocation8 + $0x20] sm:$0xff]   ;;  %v704_v26 = vld [vmem:[#allocation8 + $0x18] sm:$0xff]   ;;  %v705_v27 = vld [vmem:[#allocation8 + $0x10] sm:$0xff]  }
  0x43   :  { %609 = vmatpush3.bf16.msra.mxu0 %v689_v2  ;;  %621 = vmatpush3.bf16.msra.mxu1 %v693_v5  ;;  %v706_v28 = vld [vmem:[#allocation8 + $0x8] sm:$0xff]   ;;  %v707_v29 = vld [vmem:[#allocation8] sm:$0xff]   ;;  %v708_v30 = vld [vmem:[#allocation10 + $0x38] sm:$0xff]  }
  0x44   :  { %610 = vmatprep.subr.bf16.mxu0 %v857_v0  ;;  %622 = vmatprep.subr.bf16.mxu1 %v857_v0  ;;  %v709_v31 = vld [vmem:[#allocation10 + $0x30] sm:$0xff]   ;;  %v710_v32 = vld [vmem:[#allocation10 + $0x28] sm:$0xff]   ;;  %v547_v33 = vld [vmem:[%s992_s4] ss:$0 sm:$0xff] }
  0x45   :  { %v711_v41 = vld [vmem:[#allocation10 + $0x20] sm:$0xff]   ;;  %v712_v42 = vld [vmem:[#allocation10 + $0x18] sm:$0xff]   ;;  %v713_v43 = vld [vmem:[#allocation10 + $0x10] sm:$0xff]  }
  0x46   :  { %v714_v44 = vld [vmem:[#allocation10 + $0x8] sm:$0xff]   ;;  %v715_v45 = vld [vmem:[#allocation10] sm:$0xff]   ;;  %v556_v46 = vld [vmem:[%s994_s6] ss:$0 sm:$0xff]  ;;  %s822_s6 = scalar_lea.vmem %s531_s17, 128 }
  0x47   :  { %611 = vmatpush3.bf16.msra.mxu0 %v690_v4  ;;  %623 = vmatpush3.bf16.msra.mxu1 %v694_v7  ;;  %v565_v54 = vld [vmem:[%s996_s8] ss:$0 sm:$0xff]  ;;  %p823_p11 = scmp.ne.s32.totalorder %s531_s17, %s822_s6  ;;  %p828_p13 = scmp.lt.s32.totalorder %s822_s6, %s822_s6 }
  0x48   :  { %612 = vmatprep.subr.bf16.mxu0 %v857_v0  ;;  %624 = vmatprep.subr.bf16.mxu1 %v857_v0 }
  0x49   :  { %p829_p0 = por %p828_p13, %p827_p12 }
  0x4b   :  { %613 = vmatpush3.bf16.msra.mxu0 %v691_v6  ;;  %625 = vmatpush3.bf16.msra.mxu1 %v695_v9  ;;  %p830_p1 = pnand %p829_p0, %p823_p11 }
  0x4c   :  { %638 = vmatprep.subr.bf16.mxu0 %v857_v0  ;;  %626 = vmatprep.subr.bf16.mxu1 %v857_v0 }
  0x4e   :  { %615 = vmatmul.mubr.msk.bf16.vlgmr.msra.gmra.mxu0 %vm140_vm1, %v100_v8 }
  0x4f   :  { %654 = vmatprep.mubr.msk.bf16.mxu0 %vm858_vm0, %v857_v0  ;;  %627 = vmatpush3.bf16.msra.mxu1 %v696_v10 }
  0x50   :  { %628 = vmatprep.subr.bf16.mxu1 %v857_v0  ;;  %639 = vmatpush3.bf16.msra.mxu0 %v700_v14 }
  0x51   :  { %640 = vmatprep.subr.bf16.mxu0 %v857_v0 }
  0x53   :  { %629 = vmatpush3.bf16.msra.mxu1 %v697_v11 }
  0x54   :  { %630 = vmatprep.subr.bf16.mxu1 %v857_v0  ;;  %641 = vmatpush3.bf16.msra.mxu0 %v701_v15 }
  0x55   :  { %642 = vmatprep.subr.bf16.mxu0 %v857_v0 }
  0x57   :  { %631 = vmatpush3.bf16.msra.mxu1 %v698_v12 }
  0x58   :  { %632 = vmatprep.subr.bf16.mxu1 %v857_v0  ;;  %643 = vmatpush3.bf16.msra.mxu0 %v702_v16 }
  0x59   :  { %644 = vmatprep.subr.bf16.mxu0 %v857_v0 }
  0x5b   :  { %633 = vmatpush3.bf16.msra.mxu1 %v699_v13 }
  0x5c   :  { %658 = vmatprep.subr.bf16.mxu1 %v857_v0  ;;  %645 = vmatpush3.bf16.msra.mxu0 %v703_v25 }
  0x5d   :  { %646 = vmatprep.subr.bf16.mxu0 %v857_v0 }
  0x60   :  { %647 = vmatpush3.bf16.msra.mxu0 %v704_v26 }
  0x61   :  { %648 = vmatprep.subr.bf16.mxu0 %v857_v0 }
  0x64   :  { %649 = vmatpush3.bf16.msra.mxu0 %v705_v27 }
  0x65   :  { %650 = vmatprep.subr.bf16.mxu0 %v857_v0 }
  0x68   :  { %651 = vmatpush3.bf16.msra.mxu0 %v706_v28 }
  0x69   :  { %652 = vmatprep.subr.bf16.mxu0 %v857_v0 }
  0x6c   :  { %653 = vmatpush3.bf16.msra.mxu0 %v707_v29 }
 0x10e   :  { %v178_v18 = vpop.f32.mrf.mxu0 }
 0x10f   :  { %v179_v19 = vadd.f32 %v541_v17, %v178_v18 }
 0x110   :  { %v616_v20 = vpop.f32.mrf.mxu0 }
 0x111   :  { %716 = vtanh.f32 %v179_v19 }
 0x112   :  { %v181_v21 = vpop.f32.mrf.mxu0 }
 0x114   :  { %v617_v22 = vpop.f32.mrf.mxu0 }
 0x11e   :  { %v717_v23 = vpop.eup %716 }
 0x11f   :  { %v185_v24 = vpack.c.bf16 %v717_v23, %v717_v23 }
 0x121   :  { %635 = vmatmul.mubr.bf16.vlgmr.msra.gmra.mxu1 %v185_v24 }
 0x122   :  { %674 = vmatprep.mubr.msk.bf16.mxu1 %vm858_vm0, %v857_v0  ;;  %659 = vmatpush3.bf16.msra.mxu1 %v708_v30 }
 0x123   :  { %660 = vmatprep.subr.bf16.mxu1 %v857_v0 }
 0x126   :  { %661 = vmatpush3.bf16.msra.mxu1 %v709_v31 }
 0x127   :  { %662 = vmatprep.subr.bf16.mxu1 %v857_v0 }
 0x12a   :  { %663 = vmatpush3.bf16.msra.mxu1 %v710_v32 }
 0x12b   :  { %664 = vmatprep.subr.bf16.mxu1 %v857_v0 }
 0x12e   :  { %665 = vmatpush3.bf16.msra.mxu1 %v711_v41 }
 0x12f   :  { %666 = vmatprep.subr.bf16.mxu1 %v857_v0 }
 0x132   :  { %667 = vmatpush3.bf16.msra.mxu1 %v712_v42 }
 0x133   :  { %668 = vmatprep.subr.bf16.mxu1 %v857_v0 }
 0x136   :  { %669 = vmatpush3.bf16.msra.mxu1 %v713_v43 }
 0x137   :  { %670 = vmatprep.subr.bf16.mxu1 %v857_v0 }
 0x13a   :  { %671 = vmatpush3.bf16.msra.mxu1 %v714_v44 }
 0x13b   :  { %672 = vmatprep.subr.bf16.mxu1 %v857_v0 }
 0x13e   :  { %673 = vmatpush3.bf16.msra.mxu1 %v715_v45 }
 0x1e1   :  { %v291_v34 = vpop.f32.mrf.mxu1 }
 0x1e2   :  { %v292_v35 = vadd.f32 %v547_v33, %v291_v34 }
 0x1e3   :  { %v636_v36 = vpop.f32.mrf.mxu1 }
 0x1e4   :  { %718 = vtanh.f32 %v292_v35 }
 0x1e5   :  { %v294_v37 = vpop.f32.mrf.mxu1 }
 0x1e7   :  { %v637_v38 = vpop.f32.mrf.mxu1 }
 0x1f1   :  { %v719_v39 = vpop.eup %718 }
 0x1f2   :  { %v298_v40 = vpack.c.bf16 %v719_v39, %v719_v39 }
 0x1f4   :  { %655 = vmatmul.mubr.bf16.vlgmr.msra.gmra.mxu0 %v298_v40 }
 0x2b4   :  { %v404_v47 = vpop.f32.mrf.mxu0 }
 0x2b5   :  { %v405_v48 = vadd.f32 %v556_v46, %v404_v47 }
 0x2b6   :  { %v656_v49 = vpop.f32.mrf.mxu0 }
 0x2b7   :  { %720 = vtanh.f32 %v405_v48 }
 0x2b8   :  { %v407_v50 = vpop.f32.mrf.mxu0 }
 0x2ba   :  { %v657_v51 = vpop.f32.mrf.mxu0 }
 0x2c4   :  { %v721_v52 = vpop.eup %720 }
 0x2c5   :  { %v411_v53 = vpack.c.bf16 %v721_v52, %v721_v52 }
 0x2c7   :  { %675 = vmatmul.mubr.bf16.vlgmr.msra.gmra.mxu1 %v411_v53 }
 0x387   :  { %v517_v55 = vpop.f32.mrf.mxu1 }
 0x388   :  { %v518_v56 = vadd.f32 %v565_v54, %v517_v55 }
 0x389   :  { %v676_v57 = vpop.f32.mrf.mxu1 }
 0x38a   :  { %523 = vst [vmem:[#allocation11] sm:$0xff] %v518_v56 }
 0x38b   :  { %v520_v58 = vpop.f32.mrf.mxu1 }
 0x38c   :  { %833 = shalt.err (!%p830_p1)
}
 0x38d   :  { %533 = dma.vmem_to_hbm [thread:$0]  %s531_s17, 128, %s997_s9, [#allocation4]   ;;  %v677_v59 = vpop.f32.mrf.mxu1 }
 0x38e   :  { %848 = dma.done.wait [#allocation4], 128  }
 0x38f   :  { %849 = vsyncadd [#allocation4], 4294967168 }
 0x390   :  { %537 = vsyncpa [#allocation3], 1 }
 0x391   :  { %538 = vsyncpa [#allocation6], 1 }
 0x392   :  { %539 = vsyncpa [#allocation9], 1 }
 0x393   :  { %540 = vsyncpa [#allocation4], 1 }

</bundles_post_ra>
